<compile_context>
chip_gen: v7x
topology: tpu7x:2x2x1
jax: 0.10.0
libtpu: 0.0.40
codegen_flags: <defaults>
</compile_context>

<pallas_src>
import functools

import jax
import jax.numpy as jnp
from jax.experimental import pallas as pl
from jax.experimental.pallas import tpu as pltpu

LANE = 128  # TPU lane width


def _round_up(x, m):
    return ((x + m - 1) // m) * m


def _linear_kernel(x_ref, wt_ref, b_ref, o_ref):
    # x: (tm, L) bf16   wt: (L, L) f32 (resident)   b: (1, L) f32   o: (tm, L)
    y = jnp.dot(x_ref[...].astype(jnp.float32), wt_ref[...],
                preferred_element_type=jnp.float32)
    o_ref[...] = (y + b_ref[...]).astype(o_ref.dtype)


def _linear_lane_packed(x, w, b, *, row_tile, out_dtype):
    """Row-wise y = x @ w.T + b with rows folded lane-dense when E < 128."""
    n, e = x.shape

    # Lane packing factor (E=32 -> pack=4, L=128); pack=1 if E doesn't divide.
    pack = LANE // e if (e < LANE and LANE % e == 0) else 1
    L = pack * e

    # Pad only to pack*8 rows (sublane alignment of the packed view).
    # Aligned tables take the no-copy path: a pure reshape.
    n_pad = _round_up(n, pack * 8)
    if n_pad != n:
        x = jnp.pad(x, ((0, n_pad - n), (0, 0)))
    rows = n_pad // pack
    xp = x.reshape(rows, L)

    # Largest row tile that fits comfortably; multiple of 8 sublanes.
    tm = max(8, min(_round_up(row_tile, 8), rows))
    grid = (pl.cdiv(rows, tm),)

    # kron(I_pack, W^T): block-diagonal so each packed lane-group sees W^T.
    # Kept f32 (64 KiB) -- fetched once (constant index map), resident after.
    wt = jnp.kron(jnp.eye(pack, dtype=jnp.float32), w.T.astype(jnp.float32))
    bias = jnp.tile(b.astype(jnp.float32), pack)[None, :]

    in_b = jnp.dtype(xp.dtype).itemsize
    out_b = jnp.dtype(out_dtype).itemsize
    cost = pl.CostEstimate(
        flops=2 * rows * L * L,
        transcendentals=0,
        bytes_accessed=rows * L * (in_b + out_b) + L * L * 4 + L * 4)

    # Double-buffered per-step working set; only raise the scoped-VMEM limit
    # if a caller scales the tile past the default budgets (16 MiB on v5e).
    step_bytes = 2 * tm * L * (in_b + out_b) + L * L * 4 + L * 4
    cp_kwargs = dict(dimension_semantics=("parallel",))
    if step_bytes > (12 << 20):
        cp_kwargs["vmem_limit_bytes"] = int(step_bytes + (8 << 20))

    out = pl.pallas_call(
        _linear_kernel,
        out_shape=jax.ShapeDtypeStruct((rows, L), out_dtype),
        grid_spec=pltpu.PrefetchScalarGridSpec(
            num_scalar_prefetch=0,
            grid=grid,
            in_specs=[
                pl.BlockSpec((tm, L), lambda i: (i, 0)),   # row tile (streamed)
                pl.BlockSpec((L, L), lambda i: (0, 0)),    # weight (fetched once)
                pl.BlockSpec((1, L), lambda i: (0, 0)),    # bias   (fetched once)
            ],
            out_specs=pl.BlockSpec((tm, L), lambda i: (i, 0)),
        ),
        compiler_params=pltpu.CompilerParams(**cp_kwargs),
        cost_estimate=cost,
    )(xp, wt, bias)

    y = out.reshape(rows * pack, e)   # free re-layout of the packed rows
    if n_pad != n:
        y = y[:n]                     # trim only when padding actually happened
    return y


@functools.partial(jax.jit, static_argnames=("row_tile", "out_dtype"))
def gar_forward_pallas(user_emb, user_w, user_b, item_emb, item_w, item_b,
                       *, row_tile=8192, out_dtype=jnp.bfloat16):
    """(user_emb @ user_w.T + user_b, item_emb @ item_w.T + item_b)."""
    user_out = _linear_lane_packed(user_emb, user_w, user_b,
                                   row_tile=row_tile, out_dtype=out_dtype)
    item_out = _linear_lane_packed(item_emb, item_w, item_b,
                                   row_tile=row_tile, out_dtype=out_dtype)
    return user_out, item_out


class GARLearnerPallas:
    """JAX/Pallas port of GAR_Learner's forward() pass."""

    def __init__(self, emb_size, num_users, num_items, key):
        self.latent_size = emb_size
        k_u, k_i = jax.random.split(key)
        # Frozen "pretrained" embeddings -- synthetic & deterministic
        # (the original loads them from .pt files; we do NOT do that here).
        # Stored bf16: the forward pass is HBM-bandwidth bound.
        self.user_emb = jax.random.normal(
            k_u, (num_users, emb_size), jnp.float32).astype(jnp.bfloat16)
        self.item_emb = jax.random.normal(
            k_i, (num_items, emb_size), jnp.float32).astype(jnp.bfloat16)
        # Per the module __init__: both mlps start as identity weight, zero bias.
        eye = jnp.eye(emb_size, dtype=jnp.float32)
        self.user_w = eye
        self.user_b = jnp.zeros((emb_size,), jnp.float32)
        self.item_w = eye
        self.item_b = jnp.zeros((emb_size,), jnp.float32)
        # TODO(synk): generator MLP (Linear->BN1d->Tanh->Dropout->Linear) and the
        # content tensors are only used in generate_*_emb(), not in forward();
        # they are intentionally not part of this forward-pass kernel.

    def forward(self):
        # Explicit bf16 output keeps the write stream halved by design.
        return gar_forward_pallas(self.user_emb, self.user_w, self.user_b,
                                  self.item_emb, self.item_w, self.item_b,
                                  out_dtype=jnp.bfloat16)


def _ref_linear(x, w, b, out_dtype):
    # Reference mirrors kernel precision: f32 weight/accumulate on bf16 inputs.
    y = x.astype(jnp.float32) @ w.T.astype(jnp.float32) + b.astype(jnp.float32)
    return y.astype(out_dtype)


if __name__ == "__main__":
    emb_size = 32          # latent_size
    num_users = 64
    num_items = 96
    key = jax.random.PRNGKey(0)

    model = GARLearnerPallas(emb_size, num_users, num_items, key)
    user_out, item_out = model.forward()
    jax.block_until_ready((user_out, item_out))

    assert user_out.shape == (num_users, emb_size)
    assert item_out.shape == (num_items, emb_size)

    # Check 1: module semantics (identity weight, zero bias).
    ref_u = _ref_linear(model.user_emb, model.user_w, model.user_b, user_out.dtype)
    ref_i = _ref_linear(model.item_emb, model.item_w, model.item_b, item_out.dtype)
    assert jnp.allclose(user_out.astype(jnp.float32), ref_u.astype(jnp.float32),
                        atol=2e-2, rtol=2e-2)
    assert jnp.allclose(item_out.astype(jnp.float32), ref_i.astype(jnp.float32),
                        atol=2e-2, rtol=2e-2)

    # Check 2: block-diagonal packing + per-table weights (non-identity).
    k1, k2, k3, k4 = jax.random.split(jax.random.PRNGKey(1), 4)
    wu = 0.1 * jax.random.normal(k1, (emb_size, emb_size), jnp.float32)
    bu = 0.1 * jax.random.normal(k2, (emb_size,), jnp.float32)
    wi = 0.1 * jax.random.normal(k3, (emb_size, emb_size), jnp.float32)
    bi = 0.1 * jax.random.normal(k4, (emb_size,), jnp.float32)
    uo, io = gar_forward_pallas(model.user_emb, wu, bu, model.item_emb, wi, bi)
    jax.block_until_ready((uo, io))
    assert jnp.allclose(uo.astype(jnp.float32),
                        _ref_linear(model.user_emb, wu, bu, uo.dtype).astype(jnp.float32),
                        atol=2e-2, rtol=2e-2)
    assert jnp.allclose(io.astype(jnp.float32),
                        _ref_linear(model.item_emb, wi, bi, io.dtype).astype(jnp.float32),
                        atol=2e-2, rtol=2e-2)

    # Check 3: non-aligned row counts (pad + trim path) and a multi-step grid.
    k5, k6 = jax.random.split(jax.random.PRNGKey(2))
    xu3 = jax.random.normal(k5, (70, emb_size), jnp.float32).astype(jnp.bfloat16)
    xi3 = jax.random.normal(k6, (100, emb_size), jnp.float32).astype(jnp.bfloat16)
    uo3, io3 = gar_forward_pallas(xu3, wu, bu, xi3, wi, bi, row_tile=8)
    jax.block_until_ready((uo3, io3))
    assert uo3.shape == (70, emb_size) and io3.shape == (100, emb_size)
    assert jnp.allclose(uo3.astype(jnp.float32),
                        _ref_linear(xu3, wu, bu, uo3.dtype).astype(jnp.float32),
                        atol=2e-2, rtol=2e-2)
    assert jnp.allclose(io3.astype(jnp.float32),
                        _ref_linear(xi3, wi, bi, io3.dtype).astype(jnp.float32),
                        atol=2e-2, rtol=2e-2)

    print("KERNEL_OK")
</pallas_src>

<mosaic_0001>
module attributes {stable_mosaic.version = 11 : i64} {
  func.func @_linear_kernel(%arg0: i32, %arg1: memref<24x128xbf16, #tpu.memory_space<vmem>>, %arg2: memref<128x128xf32, #tpu.memory_space<vmem>>, %arg3: memref<1x128xf32, #tpu.memory_space<vmem>>, %arg4: memref<24x128xbf16, #tpu.memory_space<vmem>>) attributes {dimension_semantics = [#tpu.dimension_semantics<parallel>], iteration_bounds = array<i64: 1>, scalar_prefetch = 0 : i64, scratch_operands = 0 : i64, tpu.core_type = #tpu.core_type<tc>, window_params = [{transform_indices = @transform_0, window_bounds = array<i64: 24, 128>}, {pipeline_mode = #tpu.pipeline_mode<synchronous>, transform_indices = @transform_1, window_bounds = array<i64: 128, 128>}, {pipeline_mode = #tpu.pipeline_mode<synchronous>, transform_indices = @transform_2, window_bounds = array<i64: 1, 128>}, {transform_indices = @transform_3, window_bounds = array<i64: 24, 128>}]} {
    %c0 = arith.constant 0 : index
    %c0_0 = arith.constant 0 : index
    %0 = vector.load %arg1[%c0, %c0_0] : memref<24x128xbf16, #tpu.memory_space<vmem>>, vector<24x128xbf16>
    %1 = arith.extf %0 : vector<24x128xbf16> to vector<24x128xf32>
    %c0_1 = arith.constant 0 : index
    %c0_2 = arith.constant 0 : index
    %2 = vector.load %arg2[%c0_1, %c0_2] : memref<128x128xf32, #tpu.memory_space<vmem>>, vector<128x128xf32>
    %cst = arith.constant dense<0.000000e+00> : vector<24x128xf32>
    %3 = tpu.matmul %1, %2, %cst {dimension_numbers = #tpu.dot_dimension_numbers<[1], [0], [0], [1], [0, 0, 1, 1], [], []>} : vector<24x128xf32>, vector<128x128xf32>, vector<24x128xf32> -> vector<24x128xf32>
    %c0_3 = arith.constant 0 : index
    %c0_4 = arith.constant 0 : index
    %4 = vector.load %arg3[%c0_3, %c0_4] : memref<1x128xf32, #tpu.memory_space<vmem>>, vector<1x128xf32>
    %5 = vector.broadcast %4 : vector<1x128xf32> to vector<24x128xf32>
    %6 = arith.addf %3, %5 : vector<24x128xf32>
    %7 = arith.truncf %6 : vector<24x128xf32> to vector<24x128xbf16>
    %c0_5 = arith.constant 0 : index
    %c0_6 = arith.constant 0 : index
    %8 = vector.load %arg4[%c0_5, %c0_6] : memref<24x128xbf16, #tpu.memory_space<vmem>>, vector<24x128xbf16>
    tpu.vector_store %arg4[%c0_5, %c0_6], %7 {strides = array<i32>} : memref<24x128xbf16, #tpu.memory_space<vmem>>, vector<24x128xbf16>,
    return
  }
  func.func @transform_0(%arg0: i32) -> (i32, i32) {
    %c0_i32 = arith.constant 0 : i32
    %c0_i32_0 = arith.constant 0 : i32
    return %arg0, %c0_i32 : i32, i32
  }
  func.func @transform_1(%arg0: i32) -> (i32, i32) {
    %c0_i32 = arith.constant 0 : i32
    %c0_i32_0 = arith.constant 0 : i32
    %c0_i32_1 = arith.constant 0 : i32
    return %c0_i32, %c0_i32_0 : i32, i32
  }
  func.func @transform_2(%arg0: i32) -> (i32, i32) {
    %c0_i32 = arith.constant 0 : i32
    %c0_i32_0 = arith.constant 0 : i32
    %c0_i32_1 = arith.constant 0 : i32
    return %c0_i32, %c0_i32_0 : i32, i32
  }
  func.func @transform_3(%arg0: i32) -> (i32, i32) {
    %c0_i32 = arith.constant 0 : i32
    %c0_i32_0 = arith.constant 0 : i32
    return %arg0, %c0_i32 : i32, i32
  }
}

module attributes {stable_mosaic.version = 11 : i64} {
  func.func @_linear_kernel(%arg0: i32, %arg1: memref<16x128xbf16, #tpu.memory_space<vmem>>, %arg2: memref<128x128xf32, #tpu.memory_space<vmem>>, %arg3: memref<1x128xf32, #tpu.memory_space<vmem>>, %arg4: memref<16x128xbf16, #tpu.memory_space<vmem>>) attributes {dimension_semantics = [#tpu.dimension_semantics<parallel>], iteration_bounds = array<i64: 1>, scalar_prefetch = 0 : i64, scratch_operands = 0 : i64, tpu.core_type = #tpu.core_type<tc>, window_params = [{transform_indices = @transform_0, window_bounds = array<i64: 16, 128>}, {pipeline_mode = #tpu.pipeline_mode<synchronous>, transform_indices = @transform_1, window_bounds = array<i64: 128, 128>}, {pipeline_mode = #tpu.pipeline_mode<synchronous>, transform_indices = @transform_2, window_bounds = array<i64: 1, 128>}, {transform_indices = @transform_3, window_bounds = array<i64: 16, 128>}]} {
    %c0 = arith.constant 0 : index
    %c0_0 = arith.constant 0 : index
    %0 = vector.load %arg1[%c0, %c0_0] : memref<16x128xbf16, #tpu.memory_space<vmem>>, vector<16x128xbf16>
    %1 = arith.extf %0 : vector<16x128xbf16> to vector<16x128xf32>
    %c0_1 = arith.constant 0 : index
    %c0_2 = arith.constant 0 : index
    %2 = vector.load %arg2[%c0_1, %c0_2] : memref<128x128xf32, #tpu.memory_space<vmem>>, vector<128x128xf32>
    %cst = arith.constant dense<0.000000e+00> : vector<16x128xf32>
    %3 = tpu.matmul %1, %2, %cst {dimension_numbers = #tpu.dot_dimension_numbers<[1], [0], [0], [1], [0, 0, 1, 1], [], []>} : vector<16x128xf32>, vector<128x128xf32>, vector<16x128xf32> -> vector<16x128xf32>
    %c0_3 = arith.constant 0 : index
    %c0_4 = arith.constant 0 : index
    %4 = vector.load %arg3[%c0_3, %c0_4] : memref<1x128xf32, #tpu.memory_space<vmem>>, vector<1x128xf32>
    %5 = vector.broadcast %4 : vector<1x128xf32> to vector<16x128xf32>
    %6 = arith.addf %3, %5 : vector<16x128xf32>
    %7 = arith.truncf %6 : vector<16x128xf32> to vector<16x128xbf16>
    %c0_5 = arith.constant 0 : index
    %c0_6 = arith.constant 0 : index
    %8 = vector.load %arg4[%c0_5, %c0_6] : memref<16x128xbf16, #tpu.memory_space<vmem>>, vector<16x128xbf16>
    tpu.vector_store %arg4[%c0_5, %c0_6], %7 {strides = array<i32>} : memref<16x128xbf16, #tpu.memory_space<vmem>>, vector<16x128xbf16>,
    return
  }
  func.func @transform_0(%arg0: i32) -> (i32, i32) {
    %c0_i32 = arith.constant 0 : i32
    %c0_i32_0 = arith.constant 0 : i32
    return %arg0, %c0_i32 : i32, i32
  }
  func.func @transform_1(%arg0: i32) -> (i32, i32) {
    %c0_i32 = arith.constant 0 : i32
    %c0_i32_0 = arith.constant 0 : i32
    %c0_i32_1 = arith.constant 0 : i32
    return %c0_i32, %c0_i32_0 : i32, i32
  }
  func.func @transform_2(%arg0: i32) -> (i32, i32) {
    %c0_i32 = arith.constant 0 : i32
    %c0_i32_0 = arith.constant 0 : i32
    %c0_i32_1 = arith.constant 0 : i32
    return %c0_i32, %c0_i32_0 : i32, i32
  }
  func.func @transform_3(%arg0: i32) -> (i32, i32) {
    %c0_i32 = arith.constant 0 : i32
    %c0_i32_0 = arith.constant 0 : i32
    return %arg0, %c0_i32 : i32, i32
  }
}

</mosaic_0001>

<bundles_post_ra>
// kernel: tile.18
= control target key start
LH: loop header
LB: loop body
LE: loop exit
PB: predicated region body
PF: predicated region fallthrough
CT: control target
= control target key end

     0   :  { %s22_s0 = inlined_call_operand.vmem [shape: f32[32], index: 0, kind: input, shape index: {}]   ;;  %s23_s1 = inlined_call_operand.vmem [shape: f32[4,32], index: 1, kind: output, shape index: {}]  }
   0x1   :  { %v4_v0 = vld [vmem:[%s22_s0] ss:$0 sm:$0xff] }
   0x2   :  { %5 = vst [vmem:[%s23_s1] sm:$0xf] %v4_v0 }

// kernel: tile.19
= control target key start
LH: loop header
LB: loop body
LE: loop exit
PB: predicated region body
PF: predicated region fallthrough
CT: control target
= control target key end

     0   :  { %vm7_vm0 = vcmask 261120   ;;  %s37_s8 = smov 32   ;;  %s38_s9 = smov 64   ;;  %vm13_vm1 = vcmask 1048320   ;;  %vm19_vm2 = vcmask 785920   ;;  %vm25_vm3 = vcmask 523520   ;;  %s55_s0 = inlined_call_operand.vmem [shape: f32[4,32], index: 0, kind: input, shape index: {}]   ;;  %s56_s1 = inlined_call_operand.vmem [shape: f32[1,128], index: 1, kind: output, shape index: {}]  }
   0x1   :  { %v4_v0 = vld [vmem:[%s55_s0] sm:$0xf]  ;;  %s36_s0 = smov 96  }
   0x2   :  { %5 = vst [vmem:[#allocation1] sm:$0xf] %v4_v0 }
   0x9   :  { %v10_v1 = vld [vmem:[#allocation1 + $0x3] sm:$0x1]   ;;  %v22_v2 = vld [vmem:[#allocation1 + $0x1] sm:$0x1]   ;;  %v6_v3 = vld [vmem:[#allocation1] sm:$0x1]  }
   0xa   :  { %11 = vrot.lane.b32.xlu0 %v10_v1, %s36_s0  ;;  %23 = vrot.lane.b32.xlu1 %v22_v2, %s37_s8  ;;  %v16_v4 = vld [vmem:[#allocation1 + $0x2] sm:$0x1]   ;;  %8 = vst.msk [vmem:[#allocation0] sm:$0x1] %vm7_vm0, %v6_v3  }
   0xe   :  { %17 = vrot.lane.b32.xlu0 %v16_v4, %s38_s9 }
  0x7c   :  { %v12_v5 = vpop.permute.xlu0 %11   ;;  %v24_v6 = vpop.permute.xlu1 %23  }
  0x7d   :  { %14 = vst.msk [vmem:[#allocation0] sm:$0x1] %vm13_vm1, %v12_v5  }
  0x80   :  { %v18_v7 = vpop.permute.xlu0 %17  }
  0x81   :  { %20 = vst.msk [vmem:[#allocation0] sm:$0x1] %vm19_vm2, %v18_v7  }
  0x82   :  { %26 = vst.msk [vmem:[#allocation0] sm:$0x1] %vm25_vm3, %v24_v6  }
  0x89   :  { %v30_v8 = vld [vmem:[#allocation0] sm:$0x1] }
  0x8a   :  { %32 = vst [vmem:[%s56_s1] sm:$0x1] %v30_v8 }

// kernel: gar_forward_pallas.3
= control target key start
LH: loop header
LB: loop body
LE: loop exit
PB: predicated region body
PF: predicated region fallthrough
CT: control target
= control target key end

     0   :  { %v262_v0 = vmov 0.0|0.0   ;;  %vm263_vm0 = vmmov 0   ;;  %v264_v6 = vmov 0.0   ;;  %s351_s1 = inlined_call_operand.vmem [shape: f32[128,128], index: 1, kind: input, shape index: {}]   ;;  %s352_s0 = inlined_call_operand.vmem [shape: bf16[24,128], index: 0, kind: input, shape index: {}]   ;;  %s353_s2 = inlined_call_operand.vmem [shape: f32[1,128], index: 2, kind: input, shape index: {}]   ;;  %s354_s3 = inlined_call_operand.vmem [shape: bf16[24,128], index: 3, kind: output, shape index: {}]  }
   0x1   :  { %219 = vmatprep.subr.bf16.mxu0 %v262_v0  ;;  %243 = vmatprep.subr.bf16.mxu1 %v262_v0  ;;  %v20_v1 = vld [vmem:[%s351_s1] sm:$0xff]  ;;  %v21_v2 = vld [vmem:[%s351_s1 + $0x8] sm:$0xff]  ;;  %v22_v3 = vld [vmem:[%s351_s1 + $0x10] sm:$0xff] }
   0x2   :  { %v220_v4 = vpack.c.bf16 %v21_v2, %v20_v1  ;;  %v23_v5 = vld [vmem:[%s351_s1 + $0x18] sm:$0xff]  ;;  %210 = vmatprep.mubr.msk.f32.mxu0 %vm263_vm0, %v264_v6  ;;  %213 = vmatprep.mubr.msk.f32.mxu1 %vm263_vm0, %v264_v6  ;;  %v24_v8 = vld [vmem:[%s351_s1 + $0x20] sm:$0xff]  ;;  %v25_v9 = vld [vmem:[%s351_s1 + $0x28] sm:$0xff] }
   0x3   :  { %v223_v7 = vpack.c.bf16 %v23_v5, %v22_v3  ;;  %v226_v10 = vpack.c.bf16 %v25_v9, %v24_v8  ;;  %v26_v11 = vld [vmem:[%s351_s1 + $0x30] sm:$0xff]  ;;  %v27_v12 = vld [vmem:[%s351_s1 + $0x38] sm:$0xff]  ;;  %v28_v14 = vld [vmem:[%s351_s1 + $0x40] sm:$0xff] }
   0x4   :  { %221 = vmatpush3.bf16.msra.mxu0 %v220_v4  ;;  %251 = vmatpush3.bf16.msra.mxu1 %v220_v4  ;;  %v229_v13 = vpack.c.bf16 %v27_v12, %v26_v11  ;;  %v29_v15 = vld [vmem:[%s351_s1 + $0x48] sm:$0xff]  ;;  %v30_v17 = vld [vmem:[%s351_s1 + $0x50] sm:$0xff]  ;;  %v31_v18 = vld [vmem:[%s351_s1 + $0x58] sm:$0xff] }
   0x5   :  { %222 = vmatprep.subr.bf16.mxu0 %v262_v0  ;;  %244 = vmatprep.subr.bf16.mxu1 %v262_v0  ;;  %v232_v16 = vpack.c.bf16 %v29_v15, %v28_v14  ;;  %v235_v19 = vpack.c.bf16 %v31_v18, %v30_v17  ;;  %v32_v20 = vld [vmem:[%s351_s1 + $0x60] sm:$0xff]  ;;  %v33_v21 = vld [vmem:[%s351_s1 + $0x68] sm:$0xff]  ;;  %v34_v23 = vld [vmem:[%s351_s1 + $0x70] sm:$0xff] }
   0x6   :  { %v238_v22 = vpack.c.bf16 %v33_v21, %v32_v20  ;;  %v35_v24 = vld [vmem:[%s351_s1 + $0x78] sm:$0xff]  ;;  %v151_v26 = vld [vmem:[%s352_s0] sm:$0xff]   ;;  %v16_v29 = vld [vmem:[%s352_s0 + $0x8] sm:$0xf] }
   0x7   :  { %v241_v25 = vpack.c.bf16 %v35_v24, %v34_v23  ;;  %v152_v27 = vunpack.c.l.bf16 %v151_v26  ;;  %v153_v28 = vunpack.c.h.bf16 %v151_v26  ;;  %v19_v30 = vunpack.c.l.bf16 %v16_v29  ;;  %v143_v31 = vld [vmem:[%s353_s2] ss:$0 sm:$0xff] }
   0x8   :  { %224 = vmatpush3.bf16.msra.mxu0 %v223_v7  ;;  %252 = vmatpush3.bf16.msra.mxu1 %v223_v7 }
   0x9   :  { %225 = vmatprep.subr.bf16.mxu0 %v262_v0  ;;  %245 = vmatprep.subr.bf16.mxu1 %v262_v0 }
   0xc   :  { %227 = vmatpush3.bf16.msra.mxu0 %v226_v10  ;;  %253 = vmatpush3.bf16.msra.mxu1 %v226_v10 }
   0xd   :  { %228 = vmatprep.subr.bf16.mxu0 %v262_v0  ;;  %246 = vmatprep.subr.bf16.mxu1 %v262_v0 }
  0x10   :  { %230 = vmatpush3.bf16.msra.mxu0 %v229_v13  ;;  %254 = vmatpush3.bf16.msra.mxu1 %v229_v13 }
  0x11   :  { %231 = vmatprep.subr.bf16.mxu0 %v262_v0  ;;  %247 = vmatprep.subr.bf16.mxu1 %v262_v0 }
  0x14   :  { %233 = vmatpush3.bf16.msra.mxu0 %v232_v16  ;;  %255 = vmatpush3.bf16.msra.mxu1 %v232_v16 }
  0x15   :  { %234 = vmatprep.subr.bf16.mxu0 %v262_v0  ;;  %248 = vmatprep.subr.bf16.mxu1 %v262_v0 }
  0x18   :  { %236 = vmatpush3.bf16.msra.mxu0 %v235_v19  ;;  %256 = vmatpush3.bf16.msra.mxu1 %v235_v19 }
  0x19   :  { %237 = vmatprep.subr.bf16.mxu0 %v262_v0  ;;  %249 = vmatprep.subr.bf16.mxu1 %v262_v0 }
  0x1c   :  { %239 = vmatpush3.bf16.msra.mxu0 %v238_v22  ;;  %257 = vmatpush3.bf16.msra.mxu1 %v238_v22 }
  0x1d   :  { %240 = vmatprep.subr.bf16.mxu0 %v262_v0  ;;  %250 = vmatprep.subr.bf16.mxu1 %v262_v0 }
  0x20   :  { %242 = vmatpush3.bf16.msra.mxu0 %v241_v25  ;;  %258 = vmatpush3.bf16.msra.mxu1 %v241_v25 }
  0x23   :  { %211 = vmatmul.mubr.f32.vlgmr.msra.gmra.mrb[0].mxu0 %v152_v27  ;;  %214 = vmatmul.mubr.f32.vlgmr.msra.gmra.mrb[0].mxu1 %v153_v28 }
  0x24   :  { %216 = vmatprep.mubr.msk.f32.mxu1 %vm263_vm0, %v264_v6 }
  0x27   :  { %217 = vmatmul.mubr.f32.gmra.mrb[2].mxu1 %v19_v30 }
  0xf6   :  { %v109_v32 = vpop.f32.mrb[0].mxu0  ;;  %v114_v33 = vpop.f32.mrb[0].mxu1 }
  0xf7   :  { %v110_v34 = vadd.f32 %v143_v31, %v109_v32  ;;  %v115_v35 = vadd.f32 %v143_v31, %v114_v33  ;;  %v215_v36 = vpop.f32.mrb[1].mxu1  ;;  %v212_v37 = vpop.f32.mrb[1].mxu0 }
  0xf9   :  { %v157_v38 = vpack.c.bf16 %v115_v35, %v110_v34 }
  0xfa   :  { %v119_v39 = vpop.f32.mrb[2].mxu1 }
  0xfb   :  { %v120_v40 = vadd.f32 %v143_v31, %v119_v39  ;;  %158 = vst [vmem:[%s354_s3] sm:$0xff] %v157_v38   ;;  %v218_v41 = vpop.f32.mrb[3].mxu1 }
  0xfd   :  { %v149_v42 = vpack.c.bf16 %v120_v40, %v120_v40 }
  0xff   :  { %138 = vst [vmem:[%s354_s3 + $0x8] sm:$0xf] %v149_v42 }

// kernel: gar_forward_pallas.2
= control target key start
LH: loop header
LB: loop body
LE: loop exit
PB: predicated region body
PF: predicated region fallthrough
CT: control target
= control target key end

     0   :  { %s306_s1 = inlined_call_operand.vmem [shape: f32[128,128], index: 1, kind: input, shape index: {}]   ;;  %s307_s0 = inlined_call_operand.vmem [shape: bf16[16,128], index: 0, kind: input, shape index: {}]   ;;  %s308_s2 = inlined_call_operand.vmem [shape: f32[1,128], index: 2, kind: input, shape index: {}]   ;;  %s309_s3 = inlined_call_operand.vmem [shape: bf16[16,128], index: 3, kind: output, shape index: {}]  }
   0x1   :  { %v18_v0 = vld [vmem:[%s306_s1] sm:$0xff]  ;;  %v19_v1 = vld [vmem:[%s306_s1 + $0x8] sm:$0xff]  ;;  %v20_v2 = vld [vmem:[%s306_s1 + $0x10] sm:$0xff] }
   0x2   :  { %v197_v3 = vpack.c.bf16 %v19_v1, %v18_v0  ;;  %v21_v4 = vld [vmem:[%s306_s1 + $0x18] sm:$0xff]  ;;  %v22_v6 = vld [vmem:[%s306_s1 + $0x20] sm:$0xff]  ;;  %v23_v7 = vld [vmem:[%s306_s1 + $0x28] sm:$0xff] }
   0x3   :  { %v201_v5 = vpack.c.bf16 %v21_v4, %v20_v2  ;;  %v205_v8 = vpack.c.bf16 %v23_v7, %v22_v6  ;;  %v136_v9 = vld [vmem:[%s307_s0] sm:$0xff]   ;;  %v24_v10 = vld [vmem:[%s306_s1 + $0x30] sm:$0xff]  ;;  %v25_v11 = vld [vmem:[%s306_s1 + $0x38] sm:$0xff] }
   0x4   :  { %198 = vmatprep.subr.bf16.mxu0 %v197_v3  ;;  %v137_v12 = vunpack.c.l.bf16 %v136_v9  ;;  %v209_v13 = vpack.c.bf16 %v25_v11, %v24_v10  ;;  %v26_v14 = vld [vmem:[%s306_s1 + $0x40] sm:$0xff]  ;;  %v27_v15 = vld [vmem:[%s306_s1 + $0x48] sm:$0xff]  ;;  %v28_v17 = vld [vmem:[%s306_s1 + $0x50] sm:$0xff]  ;;  %v138_v26 = vunpack.c.h.bf16 %v136_v9 }
   0x5   :  { %200 = vmatpush3.bf16.msra.mxu0 %v197_v3  ;;  %v213_v16 = vpack.c.bf16 %v27_v15, %v26_v14  ;;  %v29_v18 = vld [vmem:[%s306_s1 + $0x58] sm:$0xff]  ;;  %v30_v20 = vld [vmem:[%s306_s1 + $0x60] sm:$0xff]  ;;  %v31_v21 = vld [vmem:[%s306_s1 + $0x68] sm:$0xff] }
   0x6   :  { %202 = vmatprep.subr.bf16.mxu0 %v201_v5  ;;  %194 = vmatprep.mubr.f32.mxu0 %v137_v12  ;;  %v217_v19 = vpack.c.bf16 %v29_v18, %v28_v17  ;;  %v221_v22 = vpack.c.bf16 %v31_v21, %v30_v20  ;;  %v32_v23 = vld [vmem:[%s306_s1 + $0x70] sm:$0xff]  ;;  %v33_v24 = vld [vmem:[%s306_s1 + $0x78] sm:$0xff]  ;;  %v130_v27 = vld [vmem:[%s308_s2] ss:$0 sm:$0xff] }
   0x7   :  { %v225_v25 = vpack.c.bf16 %v33_v24, %v32_v23 }
   0x9   :  { %204 = vmatpush3.bf16.msra.mxu0 %v201_v5 }
   0xa   :  { %206 = vmatprep.subr.bf16.mxu0 %v205_v8 }
   0xd   :  { %208 = vmatpush3.bf16.msra.mxu0 %v205_v8 }
   0xe   :  { %210 = vmatprep.subr.bf16.mxu0 %v209_v13 }
  0x11   :  { %212 = vmatpush3.bf16.msra.mxu0 %v209_v13 }
  0x12   :  { %214 = vmatprep.subr.bf16.mxu0 %v213_v16 }
  0x15   :  { %216 = vmatpush3.bf16.msra.mxu0 %v213_v16 }
  0x16   :  { %218 = vmatprep.subr.bf16.mxu0 %v217_v19 }
  0x19   :  { %220 = vmatpush3.bf16.msra.mxu0 %v217_v19 }
  0x1a   :  { %222 = vmatprep.subr.bf16.mxu0 %v221_v22 }
  0x1d   :  { %224 = vmatpush3.bf16.msra.mxu0 %v221_v22 }
  0x1e   :  { %226 = vmatprep.subr.bf16.mxu0 %v225_v25 }
  0x21   :  { %228 = vmatpush3.bf16.msra.mxu0 %v225_v25 }
  0x24   :  { %195 = vmatmul.mubr.f32.vlgmr.msra.gmra.mrb[0].mxu0 %v138_v26 }
  0xf7   :  { %v196_v28 = vpop.f32.mrb[0].mxu0 }
  0xf8   :  { %v113_v29 = vadd.f32 %v196_v28, %v130_v27  ;;  %v107_v30 = vpop.f32.mrb[1].mxu0 }
  0xf9   :  { %v108_v31 = vadd.f32 %v130_v27, %v107_v30 }
  0xfb   :  { %v142_v32 = vpack.c.bf16 %v113_v29, %v108_v31 }
  0xfd   :  { %143 = vst [vmem:[%s309_s3] sm:$0xff] %v142_v32  }

</bundles_post_ra>
